<compile_context>
chip_gen: v5e
topology: v5e:2x2
jax: 0.10.0
libtpu: 0.0.40
codegen_flags: <defaults>
</compile_context>

<pallas_src>
import functools
from math import sqrt

import jax
import jax.numpy as jnp
from jax.experimental import pallas as pl
from jax.experimental.pallas import tpu as pltpu


# --------------------------------------------------------------------------
# Prologue: K / V projection, hoisted out of the query-tile loop.
# --------------------------------------------------------------------------
def _kv_project_kernel(x_ref, w_ref, b_ref, o_ref, *, n_heads, d_head):
    """(ts, d_model) @ (d_model, H*E) + b, split head-major into (H, ts, E)."""
    p = jnp.dot(x_ref[0], w_ref[...],
                preferred_element_type=jnp.float32) + b_ref[...]
    for h in range(n_heads):
        o_ref[0, h] = p[:, h * d_head:(h + 1) * d_head].astype(o_ref.dtype)


def _project_kv_heads(x, w, b, *, n_heads, d_head, tile_s, compute_dtype,
                      vmem_limit):
    B, S, d_model = x.shape
    d_inner = n_heads * d_head
    return pl.pallas_call(
        functools.partial(_kv_project_kernel, n_heads=n_heads, d_head=d_head),
        out_shape=jax.ShapeDtypeStruct((B, n_heads, S, d_head), compute_dtype),
        grid_spec=pltpu.PrefetchScalarGridSpec(
            num_scalar_prefetch=0,
            grid=(B, S // tile_s),
            in_specs=[
                pl.BlockSpec((1, tile_s, d_model), lambda b, s: (b, s, 0)),
                pl.BlockSpec((d_model, d_inner), lambda b, s: (0, 0)),
                pl.BlockSpec((1, d_inner), lambda b, s: (0, 0)),
            ],
            out_specs=pl.BlockSpec((1, n_heads, tile_s, d_head),
                                   lambda b, s: (b, 0, s, 0)),
        ),
        compiler_params=pltpu.CompilerParams(
            dimension_semantics=("parallel", "parallel"),
            vmem_limit_bytes=vmem_limit),
    )(x, w, b)


# --------------------------------------------------------------------------
# Main kernel: flash-style multi-head attention + fused output projection.
# --------------------------------------------------------------------------
def _flash_mha_kernel(q_ref, kh_ref, vh_ref, wq_ref, bq_ref, wo_ref, bo_ref,
                      o_ref, qh_scr, m_scr, l_scr, acc_scr,
                      *, n_heads, d_key, d_val, scale, compute_dtype):
    f32 = jnp.float32
    cd = compute_dtype
    H, E, D = n_heads, d_key, d_val
    s_idx = pl.program_id(2)

    # ---- once per (batch, L-tile): fused lane-dense Q projection + init ----
    @pl.when(s_idx == 0)
    def _init():
        qp = jnp.dot(q_ref[0], wq_ref[...],
                     preferred_element_type=f32) + bq_ref[...]   # (tl, H*E) f32
        qp = qp * scale            # fold 1/sqrt(E) into Q (cheaper than scores)
        for h in range(H):
            qh_scr[h] = qp[:, h * E:(h + 1) * E].astype(cd)
        m_scr[...] = jnp.full(m_scr.shape, -jnp.inf, dtype=f32)
        l_scr[...] = jnp.zeros(l_scr.shape, dtype=f32)
        acc_scr[...] = jnp.zeros(acc_scr.shape, dtype=f32)

    # ---- one key tile: per-head online softmax, bf16 MXU ops, f32 accum ----
    for h in range(H):
        k_h = kh_ref[0, h]                                   # (ts, E) cd
        v_h = vh_ref[0, h]                                   # (ts, D) cd
        s_h = jnp.einsum('le,se->ls', qh_scr[h], k_h,
                         preferred_element_type=f32)         # (tl, ts) f32
        m_prev = m_scr[h]                                    # (tl, 1)
        m_new = jnp.maximum(m_prev, jnp.max(s_h, axis=-1, keepdims=True))
        alpha = jnp.exp(m_prev - m_new)
        p_h = jnp.exp(s_h - m_new)
        l_scr[h] = alpha * l_scr[h] + jnp.sum(p_h, axis=-1, keepdims=True)
        pv = jnp.dot(p_h.astype(cd), v_h, preferred_element_type=f32)  # (tl, D)
        sl = slice(h * D, (h + 1) * D)                       # lane-dense head slot
        acc_scr[:, sl] = alpha * acc_scr[:, sl] + pv
        m_scr[h] = m_new

    # ---- last key tile: normalize + fused output projection (head-sum on MXU) ----
    @pl.when(s_idx == pl.num_programs(2) - 1)
    def _finalize():
        for h in range(H):
            sl = slice(h * D, (h + 1) * D)
            acc_scr[:, sl] = acc_scr[:, sl] * pl.reciprocal(l_scr[h], approx=True)
        ctx = acc_scr[...].astype(cd)                        # (tl, H*D) lane-dense
        out = jnp.dot(ctx, wo_ref[...],
                      preferred_element_type=f32) + bo_ref[...]
        o_ref[0] = out.astype(o_ref.dtype)


# --------------------------------------------------------------------------
# Wrapper
# --------------------------------------------------------------------------
def _pick_tile(n, preferred, align):
    """Largest multiple-of-`align` divisor of n that is <= preferred."""
    t = min(preferred, n)
    t -= t % align
    t = max(t, align)
    while n % t:
        t -= align
    return t


def attention_layer_pallas(queries, keys, values, params, *, n_heads,
                           compute_dtype=jnp.bfloat16, out_dtype=jnp.float32,
                           tile_l=None, tile_s=None):
    """queries: (B, L, d_model); keys/values: (B, S, d_model) -> (B, L, d_model).

    compute_dtype: MXU operand dtype (bf16 default; f32 for exact parity).
    out_dtype: keep f32 to match the PyTorch module; pass bf16 to halve HBM
      writeback if the consumer accepts it.
    """
    B, L, d_model = queries.shape
    _, S, _ = keys.shape
    wq, bq, wk, bk, wv, bv, wo, bo = params
    H = n_heads
    d_key = wq.shape[1] // H
    d_val = wv.shape[1] // H
    d_qk, d_v = H * d_key, H * d_val
    scale = 1.0 / sqrt(d_key)

    # Lane/sublane alignment (pad on the host before calling otherwise; note
    # padded keys would additionally need a -inf score mask, not implemented).
    assert d_model % 128 == 0, "d_model must be a multiple of 128 lanes"
    assert d_qk % 128 == 0 and d_v % 128 == 0, "H*d_head must be a multiple of 128"
    assert S % 128 == 0, "key length S must be a multiple of 128"
    assert L % 8 == 0, "query length L must be a multiple of 8"

    # Tile sizes: biggest aligned divisors <= preferred.  Raise the preferred
    # sizes on v5e/v6e (128 MiB VMEM); keep the derived footprint under
    # ~48-56 MiB on v7x (64 MiB VMEM).
    tile_l = _pick_tile(L, tile_l or 256, 8)
    tile_s = _pick_tile(S, tile_s or 512, 128)
    n_l, n_s = L // tile_l, S // tile_s

    f32 = jnp.float32
    cd = compute_dtype
    isz = jnp.dtype(cd).itemsize
    oisz = jnp.dtype(out_dtype).itemsize

    # Scoped-VMEM limit derived from the actual working set (double-buffered
    # blocks + weights + scratch).
    blk = 2 * (tile_l * d_model * isz + tile_s * (d_qk + d_v) * isz
               + tile_l * d_model * oisz)
    wgt = 2 * ((d_model * d_qk + d_v * d_model) * isz + (d_qk + d_model) * 4)
    scr = (H * tile_l * d_key * isz + 2 * H * tile_l * 128 * 4
           + tile_l * d_v * 4)
    vmem_limit = int(min(max(32 * 2**20, 1.25 * (blk + wgt + scr)), 100 * 2**20))

    qc = queries.astype(cd)
    wq_c, wo_c = wq.astype(cd), wo.astype(cd)
    bq_f, bo_f = bq.astype(f32), bo.astype(f32)

    # ---- prologue: K/V projections computed once (not per query tile) ----
    kh = _project_kv_heads(keys.astype(cd), wk.astype(cd), bk.astype(f32),
                           n_heads=H, d_head=d_key, tile_s=tile_s,
                           compute_dtype=cd, vmem_limit=vmem_limit)
    vh = _project_kv_heads(values.astype(cd), wv.astype(cd), bv.astype(f32),
                           n_heads=H, d_head=d_val, tile_s=tile_s,
                           compute_dtype=cd, vmem_limit=vmem_limit)

    flops = 2 * B * (L * d_model * d_qk                 # Q projection
                     + L * S * (d_qk + d_v)             # QK^T + PV
                     + L * d_v * d_model)               # output projection
    bytes_accessed = (B * L * d_model * isz             # q
                      + n_l * B * S * (d_qk + d_v) * isz  # Kh/Vh streamed per L tile
                      + (d_model * d_qk + d_v * d_model) * isz
                      + B * L * d_model * oisz)
    cost = pl.CostEstimate(flops=int(flops), transcendentals=int(B * H * L * S),
                           bytes_accessed=int(bytes_accessed))

    kernel = functools.partial(_flash_mha_kernel, n_heads=H, d_key=d_key,
                               d_val=d_val, scale=scale, compute_dtype=cd)

    # TODO(synk): single-buffer the constant weight/bias specs below with
    # pipeline_mode=pl.Buffered(1) to shave a few MiB of VMEM on v7x.
    const2 = lambda shp: pl.BlockSpec(shp, lambda b, l, s: (0, 0))

    return pl.pallas_call(
        kernel,
        out_shape=jax.ShapeDtypeStruct((B, L, d_model), out_dtype),
        grid_spec=pltpu.PrefetchScalarGridSpec(
            num_scalar_prefetch=0,
            grid=(B, n_l, n_s),
            in_specs=[
                pl.BlockSpec((1, tile_l, d_model), lambda b, l, s: (b, l, 0)),
                pl.BlockSpec((1, H, tile_s, d_key), lambda b, l, s: (b, 0, s, 0)),
                pl.BlockSpec((1, H, tile_s, d_val), lambda b, l, s: (b, 0, s, 0)),
                const2((d_model, d_qk)),       # Wq (original lane-dense layout)
                const2((1, d_qk)),             # bq
                const2((d_v, d_model)),        # Wo (original lane-dense layout)
                const2((1, d_model)),          # bo
            ],
            out_specs=pl.BlockSpec((1, tile_l, d_model), lambda b, l, s: (b, l, 0)),
            scratch_shapes=[
                pltpu.VMEM((H, tile_l, d_key), cd),      # cached, scaled Q heads
                pltpu.VMEM((H, tile_l, 1), f32),         # running max
                pltpu.VMEM((H, tile_l, 1), f32),         # running sum
                pltpu.VMEM((tile_l, d_v), f32),          # lane-dense ctx accumulator
            ],
        ),
        # b and l are safe to shard across cores: the per-(b, l) scratch state
        # is (re)initialized at s == 0 of that (b, l); only the key axis
        # carries a sequential accumulation.
        compiler_params=pltpu.CompilerParams(
            dimension_semantics=("parallel", "parallel", "arbitrary"),
            vmem_limit_bytes=vmem_limit),
        cost_estimate=cost,
    )(qc, kh, vh, wq_c, bq_f, wo_c, bo_f)


# --------------------------------------------------------------------------
# Pure-JAX reference (mirrors the PyTorch forward) + parameter init
# --------------------------------------------------------------------------
def attention_layer_ref(queries, keys, values, params, *, n_heads,
                        matmul_dtype=jnp.float32):
    """matmul_dtype lets the reference mirror the kernel's bf16-operand /
    f32-accumulation matmul precision for tight comparisons."""
    wq, bq, wk, bk, wv, bv, wo, bo = params
    f32 = jnp.float32
    c = lambda x: x.astype(matmul_dtype)
    B, L, _ = queries.shape
    _, S, _ = keys.shape
    H = n_heads
    Q = (jnp.einsum('bld,de->ble', c(queries), c(wq),
                    preferred_element_type=f32) + bq).reshape(B, L, H, -1)
    K = (jnp.einsum('bsd,de->bse', c(keys), c(wk),
                    preferred_element_type=f32) + bk).reshape(B, S, H, -1)
    V = (jnp.einsum('bsd,de->bse', c(values), c(wv),
                    preferred_element_type=f32) + bv).reshape(B, S, H, -1)
    E = Q.shape[-1]
    scale = 1.0 / sqrt(E)
    scores = jnp.einsum('blhe,bshe->bhls', c(Q * scale), c(K),
                        preferred_element_type=f32)
    A = jax.nn.softmax(scores, axis=-1)
    ctx = jnp.einsum('bhls,bshd->blhd', c(A), c(V),
                     preferred_element_type=f32).reshape(B, L, -1)
    return jnp.einsum('ble,ed->bld', c(ctx), c(wo),
                      preferred_element_type=f32) + bo


def init_params(key, d_model, n_heads):
    d_keys = d_model // n_heads
    d_values = d_model // n_heads
    ks = jax.random.split(key, 8)
    std = 1.0 / sqrt(d_model)
    # Weights stored as (in_features, out_features); biases as (1, out_features).
    wq = jax.random.normal(ks[0], (d_model, d_keys * n_heads), jnp.float32) * std
    bq = jax.random.normal(ks[1], (1, d_keys * n_heads), jnp.float32) * std
    wk = jax.random.normal(ks[2], (d_model, d_keys * n_heads), jnp.float32) * std
    bk = jax.random.normal(ks[3], (1, d_keys * n_heads), jnp.float32) * std
    wv = jax.random.normal(ks[4], (d_model, d_values * n_heads), jnp.float32) * std
    bv = jax.random.normal(ks[5], (1, d_values * n_heads), jnp.float32) * std
    wo = jax.random.normal(ks[6], (d_values * n_heads, d_model), jnp.float32) * std
    bo = jax.random.normal(ks[7], (1, d_model), jnp.float32) * std
    return (wq, bq, wk, bk, wv, bv, wo, bo)


if __name__ == "__main__":
    # Small lane-aligned config; tiles chosen so the grid exercises multiple
    # query tiles (Q-cache reset) AND multiple key tiles (online softmax).
    B, L, S = 2, 256, 256
    d_model, n_heads = 256, 2        # d_head = 128 -> fully lane-dense heads

    key = jax.random.PRNGKey(0)
    kq, kk, kv, kp = jax.random.split(key, 4)
    queries = jax.random.normal(kq, (B, L, d_model), jnp.float32)
    keys = jax.random.normal(kk, (B, S, d_model), jnp.float32)
    values = jax.random.normal(kv, (B, S, d_model), jnp.float32)
    params = init_params(kp, d_model, n_heads)

    out = attention_layer_pallas(queries, keys, values, params,
                                 n_heads=n_heads, tile_l=128, tile_s=128)
    out = jax.block_until_ready(out)
    assert out.shape == (B, L, d_model)

    # Compare against a precision-matched (bf16 matmul operands, f32 accumulation)
    # pure-JAX reference of the same forward pass.
    ref_matched = attention_layer_ref(queries, keys, values, params,
                                      n_heads=n_heads, matmul_dtype=jnp.bfloat16)
    assert jnp.allclose(out, ref_matched, atol=3e-2, rtol=3e-2), \
        "mismatch vs precision-matched reference"

    # Informational only: drift vs the full-f32 reference comes from the bf16 MXU path.
    ref_f32 = attention_layer_ref(queries, keys, values, params,
                                  n_heads=n_heads, matmul_dtype=jnp.float32)
    _ = float(jnp.max(jnp.abs(out - ref_f32)))

    print("KERNEL_OK")
</pallas_src>

<mosaic_0001>
module attributes {stable_mosaic.version = 11 : i64} {
  func.func @_kv_project_kernel(%arg0: i32, %arg1: i32, %arg2: memref<1x128x256xbf16, #tpu.memory_space<vmem>>, %arg3: memref<256x256xbf16, #tpu.memory_space<vmem>>, %arg4: memref<1x256xf32, #tpu.memory_space<vmem>>, %arg5: memref<1x2x128x128xbf16, #tpu.memory_space<vmem>>) attributes {dimension_semantics = [#tpu.dimension_semantics<parallel>, #tpu.dimension_semantics<parallel>], iteration_bounds = array<i64: 2, 2>, scalar_prefetch = 0 : i64, scratch_operands = 0 : i64, tpu.core_type = #tpu.core_type<tc>, window_params = [{transform_indices = @transform_0, window_bounds = array<i64: 1, 128, 256>}, {pipeline_mode = #tpu.pipeline_mode<synchronous>, transform_indices = @transform_1, window_bounds = array<i64: 256, 256>}, {pipeline_mode = #tpu.pipeline_mode<synchronous>, transform_indices = @transform_2, window_bounds = array<i64: 1, 256>}, {transform_indices = @transform_3, window_bounds = array<i64: 1, 2, 128, 128>}]} {
    %c0 = arith.constant 0 : index
    %c0_0 = arith.constant 0 : index
    %c0_1 = arith.constant 0 : index
    %0 = vector.load %arg2[%c0, %c0_0, %c0_1] : memref<1x128x256xbf16, #tpu.memory_space<vmem>>, vector<1x128x256xbf16>
    %1 = vector.shape_cast %0 : vector<1x128x256xbf16> to vector<128x256xbf16>
    %c0_2 = arith.constant 0 : index
    %c0_3 = arith.constant 0 : index
    %2 = vector.load %arg3[%c0_2, %c0_3] : memref<256x256xbf16, #tpu.memory_space<vmem>>, vector<256x256xbf16>
    %cst = arith.constant dense<0.000000e+00> : vector<128x256xf32>
    %3 = tpu.matmul %1, %2, %cst {dimension_numbers = #tpu.dot_dimension_numbers<[1], [0], [0], [1], [0, 0, 1, 1], [], []>} : vector<128x256xbf16>, vector<256x256xbf16>, vector<128x256xf32> -> vector<128x256xf32>
    %c0_4 = arith.constant 0 : index
    %c0_5 = arith.constant 0 : index
    %4 = vector.load %arg4[%c0_4, %c0_5] : memref<1x256xf32, #tpu.memory_space<vmem>>, vector<1x256xf32>
    %5 = vector.broadcast %4 : vector<1x256xf32> to vector<128x256xf32>
    %6 = arith.addf %3, %5 : vector<128x256xf32>
    %7 = vector.extract_strided_slice %6 {offsets = [0, 0], sizes = [128, 128], strides = [1, 1]} : vector<128x256xf32> to vector<128x128xf32>
    %8 = arith.truncf %7 : vector<128x128xf32> to vector<128x128xbf16>
    %c0_6 = arith.constant 0 : index
    %c0_7 = arith.constant 0 : index
    %c0_8 = arith.constant 0 : index
    %c0_9 = arith.constant 0 : index
    %9 = vector.load %arg5[%c0_6, %c0_7, %c0_8, %c0_9] : memref<1x2x128x128xbf16, #tpu.memory_space<vmem>>, vector<1x1x128x128xbf16>
    %10 = vector.shape_cast %9 : vector<1x1x128x128xbf16> to vector<128x128xbf16>
    %11 = vector.shape_cast %8 : vector<128x128xbf16> to vector<1x1x128x128xbf16>
    tpu.vector_store %arg5[%c0_6, %c0_7, %c0_8, %c0_9], %11 {strides = array<i32>} : memref<1x2x128x128xbf16, #tpu.memory_space<vmem>>, vector<1x1x128x128xbf16>,
    %12 = vector.extract_strided_slice %6 {offsets = [0, 128], sizes = [128, 128], strides = [1, 1]} : vector<128x256xf32> to vector<128x128xf32>
    %13 = arith.truncf %12 : vector<128x128xf32> to vector<128x128xbf16>
    %c0_10 = arith.constant 0 : index
    %c1 = arith.constant 1 : index
    %c0_11 = arith.constant 0 : index
    %c0_12 = arith.constant 0 : index
    %14 = vector.load %arg5[%c0_10, %c1, %c0_11, %c0_12] : memref<1x2x128x128xbf16, #tpu.memory_space<vmem>>, vector<1x1x128x128xbf16>
    %15 = vector.shape_cast %14 : vector<1x1x128x128xbf16> to vector<128x128xbf16>
    %16 = vector.shape_cast %13 : vector<128x128xbf16> to vector<1x1x128x128xbf16>
    tpu.vector_store %arg5[%c0_10, %c1, %c0_11, %c0_12], %16 {strides = array<i32>} : memref<1x2x128x128xbf16, #tpu.memory_space<vmem>>, vector<1x1x128x128xbf16>,
    return
  }
  func.func @transform_0(%arg0: i32, %arg1: i32) -> (i32, i32, i32) {
    %c0_i32 = arith.constant 0 : i32
    %c0_i32_0 = arith.constant 0 : i32
    return %arg0, %arg1, %c0_i32 : i32, i32, i32
  }
  func.func @transform_1(%arg0: i32, %arg1: i32) -> (i32, i32) {
    %c0_i32 = arith.constant 0 : i32
    %c0_i32_0 = arith.constant 0 : i32
    %c0_i32_1 = arith.constant 0 : i32
    return %c0_i32, %c0_i32_0 : i32, i32
  }
  func.func @transform_2(%arg0: i32, %arg1: i32) -> (i32, i32) {
    %c0_i32 = arith.constant 0 : i32
    %c0_i32_0 = arith.constant 0 : i32
    %c0_i32_1 = arith.constant 0 : i32
    return %c0_i32, %c0_i32_0 : i32, i32
  }
  func.func @transform_3(%arg0: i32, %arg1: i32) -> (i32, i32, i32, i32) {
    %c0_i32 = arith.constant 0 : i32
    %c0_i32_0 = arith.constant 0 : i32
    %c0_i32_1 = arith.constant 0 : i32
    return %arg0, %c0_i32, %arg1, %c0_i32_0 : i32, i32, i32, i32
  }
}

</mosaic_0001>

<bundles_post_ra>
// kernel: tpu_custom_call.1
= control target key start
LH: loop header
LB: loop body
LE: loop exit
PB: predicated region body
PF: predicated region fallthrough
CT: control target
= control target key end

     0   :  { %s1912_s0 = inlined_call_operand.hbm [shape: bf16[2,256,256], index: 0, kind: input, shape index: {}]   ;;  %s1913_s1 = inlined_call_operand.hbm [shape: bf16[256,256], index: 1, kind: input, shape index: {}]   ;;  %s1914_s2 = inlined_call_operand.hbm [shape: f32[1,256], index: 2, kind: input, shape index: {}]   ;;  %s1915_s3 = inlined_call_operand.hbm [shape: bf16[2,2,256,128], index: 3, kind: output, shape index: {}]  }
   0x1   :  { %1921 = sst [smem:[#allocation17_spill]] %s1913_s1 }
   0x2   :  { %1922 = sst [smem:[#allocation18_spill]] %s1914_s2 }
   0x3   :  { %1923 = sst [smem:[#allocation19_spill]] %s1915_s3 }
   0x4   :  { %8 = vsyncpa [#allocation3], 0 }
   0x5   :  { %10 = vsyncpa [#allocation3 + $0x1], 0 }
   0x6   :  { %11 = vsyncpa [#allocation6], 0 }
   0x7   :  { %12 = vsyncpa [#allocation4], 0 }
   0x8   :  { %14 = vsyncpa [#allocation4 + $0x1], 0  ;;  %s1633_s12 = smov 0   ;;  %s1635_s13 = smov 0  }
   0x9   :  { %s1637_s14 = smov 0   ;;  %s1639_s15 = smov 0  }
   0xa   :  { %s1641_s16 = smov 0   ;;  %s1643_s17 = smov 0  }
   0xb   :  { %s1645_s18 = smov 0   ;;  %s1647_s19 = smov 0  }
   0xc LB: > { %1924 = sst [smem:[#allocation14_spill]] %s1572_s12  ;;  %s948_s20 = sadd.s32 4294967295, %s1600_s19   ;;  %s1600_s19 = sphi %s1647_s19, %s20_s19   ;;  %s1596_s18 = sphi %s1645_s18, %s1948_s18   ;;  %s1592_s17 = sphi %s1643_s17, %s1947_s17   ;;  %s1588_s16 = sphi %s1641_s16, %s1946_s16   ;;  %s1584_s15 = sphi %s1639_s15, %s1945_s15   ;;  %s1580_s14 = sphi %s1637_s14, %s1944_s14   ;;  %s1576_s13 = sphi %s1635_s13, %s1943_s13   ;;  %s1572_s12 = sphi %s1633_s12, %s1942_s12  }
   0xd   : > { %s949_s21 = sadd.s32 4294967294, %s1600_s19   ;;  %p54_p0 = scmp.ne.s32.totalorder %s1576_s13, %s1572_s12 }
   0xe   : > { %p1677_p1 = scmp.eq.s32.totalorder %s948_s20, 0  ;;  %p1681_p2 = scmp.eq.s32.totalorder %s948_s20, 3 }
   0xf   : > { %p128_p3 = scmp.eq.s32.totalorder %s949_s21, 3  ;;  %p950_p5 = scmp.ge.s32.totalorder %s1600_s19, 1 }
  0x10   : > { %p1687_p4 = por %p1677_p1, %p54_p0  ;;  %p135_p7 = scmp.lt.s32.totalorder %s1600_s19, 5 }
  0x11   : > { %p1692_p6 = por %p128_p3, %p54_p0  ;;  %s1930_s1 = sld [smem:[#allocation17_spill]] }
  0x12   : > { %p1700_p8 = pnand %p950_p5, %p135_p7  ;;  %s1602_s30 = smov [#allocation5]  }
  0x13   : > { %s1928_s25 = scalar_select %p1692_p6, 1, 0 }
  0x14   : > { %p1340_p9 = pneg %p1700_p8  ;;  %s148_s4 = sshll.u32 %s1602_s30, 4  ;;  %s149_s4 = int_to_ptr.vmem [resolvable:$true] %s148_s4 }
  0x15   : > { %1929 = sst [smem:[#allocation15_spill]] %s1928_s25  ;;  %s1916_s8 = smov 128  }
  0x16   : > { %p1341_p10 = pnand %p1340_p9, %p1677_p1  ;;  %s1932_s2 = sld [smem:[#allocation18_spill]] }
  0x17   : > { %s146_s28 = sshll.u32 %s1930_s1, 4  ;;  %s1917_s9 = smov 8   ;;  %s147_s28 = int_to_ptr.hbm [resolvable:$true] %s146_s28 }
  0x18   : > { %1343 = dma.hbm_to_vmem [thread:$0]  (!%p1341_p10), %s147_s28, 4096, %s149_s4, [#allocation6], %s1916_s8, %s1916_s8, %s1917_s9  }
  0x19   : > { %s1605_s10 = smov [#allocation7]   ;;  %s29_s20 = sadd.s32 1, %s1592_s17 }
  0x1a   : > { %s163_s11 = sshll.u32 %s1605_s10, 4  ;;  %s32_s21 = sadd.s32 1, %s1596_s18  ;;  %s164_s11 = int_to_ptr.vmem [resolvable:$true] %s163_s11 }
  0x1b   : > { %p30_p11 = scmp.ge.s32.totalorder %s29_s20, 2  ;;  %s41_s26 = sadd.s32 1, %s1580_s14 }
  0x1c   : > { %s161_s7 = sshll.u32 %s1932_s2, 4  ;;  %p48_p12 = scmp.ne.s32.totalorder %s1580_s14, %s1576_s13  ;;  %s162_s7 = int_to_ptr.hbm [resolvable:$true] %s161_s7 }
  0x1d   : > { %1346 = dma.hbm_to_vmem [thread:$0]  (!%p1341_p10), %s162_s7, 32, %s164_s11, [#allocation6]  }
  0x1e   : > { %p49_p13 = scmp.eq.s32.totalorder %s1600_s19, 0  ;;  %s1950_s20 = smov (%p30_p11, %s29_s20), 0 }
  0x1f   : > { %1933 = sst [smem:[#allocation16_spill]] %s1950_s20  ;;  %s1952_s21 = smov (!%p30_p11, %s32_s21), %s1596_s18 }
  0x20   : > { %s37_s27 = ssub.s32 %s1592_s17, %s1950_s20  ;;  %p1725_p0 = por %p49_p13, %p48_p12 }
  0x21   : > { %p34_p3 = scmp.ge.s32.totalorder %s1952_s21, 2  ;;  %p1731_p5 = por %p1681_p2, %p48_p12 }
  0x22   : > { %p1357_p7 = scmp.lt.s32.totalorder %s1600_s19, 4  ;;  %s174_s4 = sand.u32 1, %s1580_s14  }
  0x23   : > { %s1954_s21 = smov (%p34_p3, %s1952_s21), 0  ;;  %s954_s5 = sshll.u32 %s174_s4, 7 }
  0x24   : > { %s36_s6 = ssub.s32 %s1596_s18, %s1954_s21  ;;  %s1178_s10 = sshll.u32 %s1592_s17, 5 }
  0x25   : > { %s38_s7 = sor.u32 %s37_s27, %s36_s6  ;;  %s957_s11 = sshll.u32 %s1596_s18, 6 }
  0x26   : > { %p39_p9 = scmp.eq.s32.totalorder %s38_s7, 0  ;;  %s184_s8 = sadd.s32 %s1178_s10, %s957_s11 }
  0x27   : > { %s178_s9 = scalar_lea.vmem [#allocation2], %s954_s5  ;;  %s958_s2 = sshll.u32 %s184_s8, 2 }
  0x28   : > { %s189_s23 = sshll.u32 %s178_s9, 4  ;;  %s186_s12 = scalar_lea.hbm %s1912_s0, %s958_s2  ;;  %s190_s23 = int_to_ptr.vmem [resolvable:$true] %s189_s23 }
  0x29   : > { %s1744_s1 = scalar_select %p39_p9, %s1580_s14, %s41_s26  }
  0x2a   : > { %p1348_p2 = pnand %p1357_p7, %p1725_p0  ;;  %s187_s3 = sshll.u32 %s186_s12, 4  ;;  %s188_s3 = int_to_ptr.hbm [resolvable:$true] %s187_s3 }
  0x2b   : > { %s175_s27 = scalar_lea.sflag [#allocation3], %s174_s4  ;;  %s1936_s6 = smov 8  }
  0x2c   : > { %s1937_s7 = smov 128   ;;  %201 = sbr.rel (%p1700_p8) target bundleno = 359 (0x167), region = 32 }
  0x2d   : > { %1350 = dma.hbm_to_vmem [thread:$0]  (!%p1348_p2), %s188_s3, 2048, %s190_s23, %s175_s27, %s1937_s7, %s1937_s7, %s1936_s6  }
  0x2e   : > { %s1759_s8 = sand.u32 (!%p1700_p8), 1, %s1576_s13  }
  0x2f   : > { %s960_s2 = sshll.u32 (!%p1700_p8), %s1759_s8, 7  ;;  %s204_s25 = scalar_lea.sflag (!%p1700_p8), [#allocation3], %s1759_s8 }
  0x30   : > { %s1765_s12 = scalar_lea.vmem (!%p1700_p8), [#allocation2], %s960_s2 }
  0x31   : > { %1559 = dma.done.wait (%p1687_p4), %s204_s25, 2048  }
  0x32   : > { %1561 = vsyncadd (%p1687_p4), %s204_s25, 4294965248 }
  0x33   : > { %1563 = dma.done.wait (%p1677_p1), [#allocation6], 4128  }
  0x34   : > { %1565 = vsyncadd (%p1677_p1), [#allocation6], 4294963168  ;;  %v1086_v0 = vld [vmem:[#allocation5 + $0x70] sm:$0xf]  ;;  %v1210_v1 = vld [vmem:[#allocation5 + $0x74] sm:$0xf0] }
  0x35   : > { %v1150_v2 = vld [vmem:[#allocation5 + $0xf0] sm:$0xf]  ;;  %v1087_v3 = vor.u32 %v1210_v1, %v1086_v0  ;;  %v1226_v4 = vld [vmem:[#allocation5 + $0xf4] sm:$0xf0]  ;;  %v1209_v5 = vld [vmem:[#allocation5 + $0x74] sm:$0xf] }
  0x36   : > { %v1088_v6 = vld [vmem:[#allocation5 + $0x78] sm:$0xf0]  ;;  %v1151_v7 = vor.u32 %v1226_v4, %v1150_v2  ;;  %v1225_v9 = vld [vmem:[#allocation5 + $0xf4] sm:$0xf]  ;;  %v1078_v11 = vld [vmem:[#allocation5 + $0x60] sm:$0xf] }
  0x37   : > { %v1091_v8 = vor.u32 %v1209_v5, %v1088_v6  ;;  %v1152_v10 = vld [vmem:[#allocation5 + $0xf8] sm:$0xf0]  ;;  %537 = vmatpush.bf16.msra.mxu0 %v1087_v3  ;;  %v1208_v13 = vld [vmem:[#allocation5 + $0x64] sm:$0xf0]  ;;  %v1142_v14 = vld [vmem:[#allocation5 + $0xe0] sm:$0xf] }
  0x38   : > { %v1155_v12 = vor.u32 %v1225_v9, %v1152_v10  ;;  %v1224_v15 = vld [vmem:[#allocation5 + $0xe4] sm:$0xf0]  ;;  %586 = vmatpush.bf16.msra.mxu1 %v1151_v7  ;;  %v1079_v16 = vor.u32 %v1208_v13, %v1078_v11  ;;  %v1207_v18 = vld [vmem:[#allocation5 + $0x64] sm:$0xf]  ;;  %v1080_v19 = vld [vmem:[#allocation5 + $0x68] sm:$0xf0] }
  0x39   : > { %635 = vmatpush.bf16.msra.mxu2 %v1091_v8  ;;  %v1143_v17 = vor.u32 %v1224_v15, %v1142_v14  ;;  %v1223_v20 = vld [vmem:[#allocation5 + $0xe4] sm:$0xf]  ;;  %v1083_v21 = vor.u32 %v1207_v18, %v1080_v19  ;;  %v1144_v22 = vld [vmem:[#allocation5 + $0xe8] sm:$0xf0]  ;;  %v1070_v23 = vld [vmem:[#allocation5 + $0x50] sm:$0xf] }
  0x3a   : > { %684 = vmatpush.bf16.msra.mxu3 %v1155_v12  ;;  %v1206_v24 = vld [vmem:[#allocation5 + $0x54] sm:$0xf0]  ;;  %v1147_v25 = vor.u32 %v1223_v20, %v1144_v22  ;;  %v1134_v26 = vld [vmem:[#allocation5 + $0xd0] sm:$0xf]  ;;  %v1205_v28 = vld [vmem:[#allocation5 + $0x54] sm:$0xf] }
  0x3b   : > { %v1222_v27 = vld [vmem:[#allocation5 + $0xd4] sm:$0xf0]  ;;  %538 = vmatpush.bf16.msra.mxu0 %v1079_v16  ;;  %v1071_v29 = vor.u32 %v1206_v24, %v1070_v23  ;;  %v1072_v30 = vld [vmem:[#allocation5 + $0x58] sm:$0xf0]  ;;  %v1221_v31 = vld [vmem:[#allocation5 + $0xd4] sm:$0xf] }
  0x3c   : > { %v1136_v32 = vld [vmem:[#allocation5 + $0xd8] sm:$0xf0]  ;;  %587 = vmatpush.bf16.msra.mxu1 %v1143_v17  ;;  %v1135_v33 = vor.u32 %v1222_v27, %v1134_v26  ;;  %v1075_v34 = vor.u32 %v1205_v28, %v1072_v30  ;;  %v1062_v35 = vld [vmem:[#allocation5 + $0x40] sm:$0xf]  ;;  %v1204_v36 = vld [vmem:[#allocation5 + $0x44] sm:$0xf0] }
  0x3d   : > { %636 = vmatpush.bf16.msra.mxu2 %v1083_v21  ;;  %v1126_v37 = vld [vmem:[#allocation5 + $0xc0] sm:$0xf]  ;;  %v1139_v38 = vor.u32 %v1221_v31, %v1136_v32  ;;  %v1220_v39 = vld [vmem:[#allocation5 + $0xc4] sm:$0xf0]  ;;  %v1203_v40 = vld [vmem:[#allocation5 + $0x44] sm:$0xf]  ;;  %v1063_v44 = vor.u32 %v1204_v36, %v1062_v35 }
  0x3e   : > { %685 = vmatpush.bf16.msra.mxu3 %v1147_v25  ;;  %v1064_v41 = vld [vmem:[#allocation5 + $0x48] sm:$0xf0]  ;;  %v1219_v42 = vld [vmem:[#allocation5 + $0xc4] sm:$0xf]  ;;  %v1127_v45 = vor.u32 %v1220_v39, %v1126_v37  ;;  %v1054_v47 = vld [vmem:[#allocation5 + $0x30] sm:$0xf] }
  0x3f   : > { %v1128_v43 = vld [vmem:[#allocation5 + $0xc8] sm:$0xf0]  ;;  %539 = vmatpush.bf16.msra.mxu0 %v1071_v29  ;;  %v1067_v46 = vor.u32 %v1203_v40, %v1064_v41  ;;  %v1202_v48 = vld [vmem:[#allocation5 + $0x34] sm:$0xf0]  ;;  %v1118_v49 = vld [vmem:[#allocation5 + $0xb0] sm:$0xf] }
  0x40   : > { %588 = vmatpush.bf16.msra.mxu1 %v1135_v33  ;;  %v1131_v50 = vor.u32 %v1219_v42, %v1128_v43  ;;  %v1218_v51 = vld [vmem:[#allocation5 + $0xb4] sm:$0xf0]  ;;  %v1201_v52 = vld [vmem:[#allocation5 + $0x34] sm:$0xf]  ;;  %v1056_v53 = vld [vmem:[#allocation5 + $0x38] sm:$0xf0]  ;;  %v1055_v56 = vor.u32 %v1202_v48, %v1054_v47 }
  0x41   : > { %637 = vmatpush.bf16.msra.mxu2 %v1075_v34  ;;  %v1217_v54 = vld [vmem:[#allocation5 + $0xb4] sm:$0xf]  ;;  %v1120_v55 = vld [vmem:[#allocation5 + $0xb8] sm:$0xf0]  ;;  %v1119_v57 = vor.u32 %v1218_v51, %v1118_v49  ;;  %v1059_v58 = vor.u32 %v1201_v52, %v1056_v53  ;;  %v1046_v59 = vld [vmem:[#allocation5 + $0x20] sm:$0xf] }
  0x42   : > { %686 = vmatpush.bf16.msra.mxu3 %v1139_v38  ;;  %v1200_v60 = vld [vmem:[#allocation5 + $0x24] sm:$0xf0]  ;;  %v1110_v61 = vld [vmem:[#allocation5 + $0xa0] sm:$0xf]  ;;  %v1123_v62 = vor.u32 %v1217_v54, %v1120_v55  ;;  %v1199_v0 = vld [vmem:[#allocation5 + $0x24] sm:$0xf] }
  0x43   : > { %540 = vmatpush.bf16.msra.mxu0 %v1063_v44  ;;  %v1216_v63 = vld [vmem:[#allocation5 + $0xa4] sm:$0xf0]  ;;  %v1048_v1 = vld [vmem:[#allocation5 + $0x28] sm:$0xf0]  ;;  %v1215_v2 = vld [vmem:[#allocation5 + $0xa4] sm:$0xf]  ;;  %v1047_v4 = vor.u32 %v1200_v60, %v1046_v59 }
  0x44   : > { %589 = vmatpush.bf16.msra.mxu1 %v1127_v45  ;;  %v1112_v3 = vld [vmem:[#allocation5 + $0xa8] sm:$0xf0]  ;;  %v1111_v5 = vor.u32 %v1216_v63, %v1110_v61  ;;  %v1051_v6 = vor.u32 %v1199_v0, %v1048_v1  ;;  %v1038_v7 = vld [vmem:[#allocation5 + $0x10] sm:$0xf]  ;;  %v1198_v8 = vld [vmem:[#allocation5 + $0x14] sm:$0xf0] }
  0x45   : > { %638 = vmatpush.bf16.msra.mxu2 %v1067_v46  ;;  %v1102_v9 = vld [vmem:[#allocation5 + $0x90] sm:$0xf]  ;;  %v1115_v10 = vor.u32 %v1215_v2, %v1112_v3  ;;  %v1214_v11 = vld [vmem:[#allocation5 + $0x94] sm:$0xf0]  ;;  %v1197_v12 = vld [vmem:[#allocation5 + $0x14] sm:$0xf]  ;;  %v1039_v16 = vor.u32 %v1198_v8, %v1038_v7 }
  0x46   : > { %687 = vmatpush.bf16.msra.mxu3 %v1131_v50  ;;  %v1040_v13 = vld [vmem:[#allocation5 + $0x18] sm:$0xf0]  ;;  %v1213_v14 = vld [vmem:[#allocation5 + $0x94] sm:$0xf]  ;;  %v1103_v17 = vor.u32 %v1214_v11, %v1102_v9  ;;  %v1030_v19 = vld [vmem:[#allocation5] sm:$0xf] }
  0x47   : > { %541 = vmatpush.bf16.msra.mxu0 %v1055_v56  ;;  %v1104_v15 = vld [vmem:[#allocation5 + $0x98] sm:$0xf0]  ;;  %v1043_v18 = vor.u32 %v1197_v12, %v1040_v13  ;;  %v1196_v20 = vld [vmem:[#allocation5 + $0x4] sm:$0xf0]  ;;  %v1094_v21 = vld [vmem:[#allocation5 + $0x80] sm:$0xf] }
  0x48   : > { %590 = vmatpush.bf16.msra.mxu1 %v1119_v57  ;;  %v1107_v22 = vor.u32 %v1213_v14, %v1104_v15  ;;  %v1212_v23 = vld [vmem:[#allocation5 + $0x84] sm:$0xf0]  ;;  %v1195_v24 = vld [vmem:[#allocation5 + $0x4] sm:$0xf]  ;;  %v1032_v25 = vld [vmem:[#allocation5 + $0x8] sm:$0xf0]  ;;  %v1031_v28 = vor.u32 %v1196_v20, %v1030_v19 }
  0x49   : > { %639 = vmatpush.bf16.msra.mxu2 %v1059_v58  ;;  %v1211_v26 = vld [vmem:[#allocation5 + $0x84] sm:$0xf]  ;;  %v1096_v27 = vld [vmem:[#allocation5 + $0x88] sm:$0xf0]  ;;  %v966_v29 = vld [vmem:[%s1765_s12] sm:$0xf]  ;;  %v1095_v31 = vor.u32 %v1212_v23, %v1094_v21  ;;  %v1035_v32 = vor.u32 %v1195_v24, %v1032_v25 }
  0x4a   : > { %688 = vmatpush.bf16.msra.mxu3 %v1123_v62  ;;  %v1180_v30 = vld [vmem:[%s1765_s12 + $0x4] sm:$0xf0]  ;;  %v1179_v33 = vld [vmem:[%s1765_s12 + $0x4] sm:$0xf]  ;;  %v968_v34 = vld [vmem:[%s1765_s12 + $0x8] sm:$0xf0]  ;;  %v1099_v35 = vor.u32 %v1211_v26, %v1096_v27 }
  0x4b   : > { %542 = vmatpush.bf16.msra.mxu0 %v1047_v4  ;;  %v967_v36 = vor.u32 %v1180_v30, %v966_v29  ;;  %v971_v37 = vor.u32 %v1179_v33, %v968_v34  ;;  %v974_v38 = vld [vmem:[%s1765_s12 + $0x10] sm:$0xf]  ;;  %v1182_v39 = vld [vmem:[%s1765_s12 + $0x14] sm:$0xf0]  ;;  %v1181_v40 = vld [vmem:[%s1765_s12 + $0x14] sm:$0xf] }
  0x4c   : > { %591 = vmatpush.bf16.msra.mxu1 %v1111_v5  ;;  %v976_v41 = vld [vmem:[%s1765_s12 + $0x18] sm:$0xf0]  ;;  %v975_v42 = vor.u32 %v1182_v39, %v974_v38  ;;  %v982_v44 = vld [vmem:[%s1765_s12 + $0x20] sm:$0xf]  ;;  %v1184_v45 = vld [vmem:[%s1765_s12 + $0x24] sm:$0xf0] }
  0x4d   : > { %640 = vmatpush.bf16.msra.mxu2 %v1051_v6  ;;  %v979_v43 = vor.u32 %v1181_v40, %v976_v41  ;;  %v1183_v46 = vld [vmem:[%s1765_s12 + $0x24] sm:$0xf]  ;;  %v984_v47 = vld [vmem:[%s1765_s12 + $0x28] sm:$0xf0]  ;;  %v983_v48 = vor.u32 %v1184_v45, %v982_v44  ;;  %v990_v50 = vld [vmem:[%s1765_s12 + $0x30] sm:$0xf] }
  0x4e   : > { %689 = vmatpush.bf16.msra.mxu3 %v1115_v10  ;;  %v987_v49 = vor.u32 %v1183_v46, %v984_v47  ;;  %v1186_v51 = vld [vmem:[%s1765_s12 + $0x34] sm:$0xf0]  ;;  %v1185_v52 = vld [vmem:[%s1765_s12 + $0x34] sm:$0xf]  ;;  %v992_v53 = vld [vmem:[%s1765_s12 + $0x38] sm:$0xf0] }
  0x4f   : > { %543 = vmatpush.bf16.msra.mxu0 %v1039_v16  ;;  %v991_v54 = vor.u32 %v1186_v51, %v990_v50  ;;  %v995_v55 = vor.u32 %v1185_v52, %v992_v53  ;;  %v998_v56 = vld [vmem:[%s1765_s12 + $0x40] sm:$0xf]  ;;  %v1188_v57 = vld [vmem:[%s1765_s12 + $0x44] sm:$0xf0]  ;;  %v1187_v58 = vld [vmem:[%s1765_s12 + $0x44] sm:$0xf] }
  0x50   : > { %592 = vmatpush.bf16.msra.mxu1 %v1103_v17  ;;  %v1000_v59 = vld [vmem:[%s1765_s12 + $0x48] sm:$0xf0]  ;;  %v999_v60 = vor.u32 %v1188_v57, %v998_v56  ;;  %v1006_v62 = vld [vmem:[%s1765_s12 + $0x50] sm:$0xf]  ;;  %v1190_v63 = vld [vmem:[%s1765_s12 + $0x54] sm:$0xf0] }
  0x51   : > { %641 = vmatpush.bf16.msra.mxu2 %v1043_v18  ;;  %v1003_v61 = vor.u32 %v1187_v58, %v1000_v59  ;;  %v1189_v0 = vld [vmem:[%s1765_s12 + $0x54] sm:$0xf]  ;;  %v1008_v1 = vld [vmem:[%s1765_s12 + $0x58] sm:$0xf0]  ;;  %v1007_v2 = vor.u32 %v1190_v63, %v1006_v62  ;;  %v1014_v4 = vld [vmem:[%s1765_s12 + $0x60] sm:$0xf] }
  0x52   : > { %690 = vmatpush.bf16.msra.mxu3 %v1107_v22  ;;  %v1011_v3 = vor.u32 %v1189_v0, %v1008_v1  ;;  %v1192_v5 = vld [vmem:[%s1765_s12 + $0x64] sm:$0xf0]  ;;  %v1191_v6 = vld [vmem:[%s1765_s12 + $0x64] sm:$0xf]  ;;  %v1016_v7 = vld [vmem:[%s1765_s12 + $0x68] sm:$0xf0] }
  0x53   : > { %544 = vmatpush.bf16.msra.mxu0 %v1031_v28  ;;  %v1015_v8 = vor.u32 %v1192_v5, %v1014_v4  ;;  %v1019_v9 = vor.u32 %v1191_v6, %v1016_v7  ;;  %v1022_v10 = vld [vmem:[%s1765_s12 + $0x70] sm:$0xf]  ;;  %v1194_v11 = vld [vmem:[%s1765_s12 + $0x74] sm:$0xf0]  ;;  %v1193_v12 = vld [vmem:[%s1765_s12 + $0x74] sm:$0xf] }
  0x54   : > { %593 = vmatpush.bf16.msra.mxu1 %v1095_v31  ;;  %v1024_v13 = vld [vmem:[%s1765_s12 + $0x78] sm:$0xf0]  ;;  %v1023_v14 = vor.u32 %v1194_v11, %v1022_v10  ;;  %v291_v16 = vld [vmem:[#allocation7] sm:$0x3]  ;;  %s1816_s3 = scalar_lea.vmem [#allocation8], %s960_s2  ;;  %s799_s22 = scalar_lea.sflag [#allocation4], %s1759_s8 }
  0x55   : > { %642 = vmatpush.bf16.msra.mxu2 %v1035_v32  ;;  %v1027_v15 = vor.u32 %v1193_v12, %v1024_v13  ;;  %v1807_v19 = vperm.slane %v291_v16, 0  ;;  %v1811_v26 = vperm.slane %v291_v16, 1 }
  0x56   : > { %691 = vmatpush.bf16.msra.mxu3 %v1099_v35  ;;  %545 = vmatmul.bf16.vlgmr.msra.gmra.mxu0 %v967_v36 }
  0x57   : > { %594 = vmatmul.bf16.vlgmr.msra.gmra.mxu1 %v971_v37 }
  0x58   : > { %643 = vmatmul.bf16.vlgmr.msra.gmra.mxu2 %v967_v36 }
  0x59   : > { %692 = vmatmul.bf16.vlgmr.msra.gmra.mxu3 %v971_v37 }
  0x66   : > { %550 = vmatmul.bf16.gmra.mxu0 %v975_v42 }
  0x67   : > { %599 = vmatmul.bf16.gmra.mxu1 %v979_v43 }
  0x68   : > { %648 = vmatmul.bf16.gmra.mxu2 %v975_v42 }
  0x69   : > { %697 = vmatmul.bf16.gmra.mxu3 %v979_v43 }
  0x76   : > { %555 = vmatmul.bf16.gmra.mxu0 %v983_v48 }
  0x77   : > { %604 = vmatmul.bf16.gmra.mxu1 %v987_v49 }
  0x78   : > { %653 = vmatmul.bf16.gmra.mxu2 %v983_v48 }
  0x79   : > { %702 = vmatmul.bf16.gmra.mxu3 %v987_v49 }
  0x86   : > { %560 = vmatmul.bf16.gmra.mxu0 %v991_v54 }
  0x87   : > { %609 = vmatmul.bf16.gmra.mxu1 %v995_v55 }
  0x88   : > { %658 = vmatmul.bf16.gmra.mxu2 %v991_v54 }
  0x89   : > { %707 = vmatmul.bf16.gmra.mxu3 %v995_v55 }
  0x96   : > { %565 = vmatmul.bf16.gmra.mxu0 %v999_v60 }
  0x97   : > { %614 = vmatmul.bf16.gmra.mxu1 %v1003_v61 }
  0x98   : > { %663 = vmatmul.bf16.gmra.mxu2 %v999_v60 }
  0x99   : > { %712 = vmatmul.bf16.gmra.mxu3 %v1003_v61 }
  0xa6   : > { %570 = vmatmul.bf16.gmra.mxu0 %v1007_v2 }
  0xa7   : > { %619 = vmatmul.bf16.gmra.mxu1 %v1011_v3 }
  0xa8   : > { %668 = vmatmul.bf16.gmra.mxu2 %v1007_v2 }
  0xa9   : > { %717 = vmatmul.bf16.gmra.mxu3 %v1011_v3 }
  0xb6   : > { %575 = vmatmul.bf16.gmra.mxu0 %v1015_v8 }
  0xb7   : > { %624 = vmatmul.bf16.gmra.mxu1 %v1019_v9 }
  0xb8   : > { %673 = vmatmul.bf16.gmra.mxu2 %v1015_v8 }
  0xb9   : > { %722 = vmatmul.bf16.gmra.mxu3 %v1019_v9 }
  0xc6   : > { %580 = vmatmul.bf16.gmra.mxu0 %v1023_v14 }
  0xc7   : > { %629 = vmatmul.bf16.gmra.mxu1 %v1027_v15 }
  0xc8   : > { %678 = vmatmul.bf16.gmra.mxu2 %v1023_v14 }
  0xc9   : > { %727 = vmatmul.bf16.gmra.mxu3 %v1027_v15 }
  0xd3   : > { %v546_v17 = vpop.f32.mrf.mxu0 }
  0xd4   : > { %v595_v18 = vpop.f32.mrf.mxu1  ;;  %v547_v20 = vadd.f32 %v546_v17, %v1807_v19 }
  0xd6   : > { %v596_v27 = vadd.f32 %v595_v18, %v547_v20 }
  0xdb   : > { %v644_v21 = vpop.f32.mrf.mxu2  ;;  %v548_v23 = vpop.f32.mrf.mxu0 }
  0xdc   : > { %v693_v22 = vpop.f32.mrf.mxu3  ;;  %v549_v24 = vadd.f32 %v548_v23, %v1807_v19  ;;  %v597_v25 = vpop.f32.mrf.mxu1  ;;  %v645_v30 = vadd.f32 %v644_v21, %v1811_v26 }
  0xde   : > { %v598_v28 = vadd.f32 %v597_v25, %v549_v24  ;;  %v694_v36 = vadd.f32 %v693_v22, %v645_v30 }
  0xe0   : > { %v1230_v29 = vpack.c.bf16 %v598_v28, %v596_v27 }
  0xe2   : > { %1231 = vst [vmem:[%s1816_s3] sm:$0xff] %v1230_v29  }
  0xe3   : > { %v646_v31 = vpop.f32.mrf.mxu2  ;;  %v551_v34 = vpop.f32.mrf.mxu0 }
  0xe4   : > { %v647_v32 = vadd.f32 %v646_v31, %v1811_v26  ;;  %v695_v33 = vpop.f32.mrf.mxu3  ;;  %v600_v35 = vpop.f32.mrf.mxu1  ;;  %v552_v39 = vadd.f32 %v551_v34, %v1807_v19 }
  0xe6   : > { %v696_v37 = vadd.f32 %v695_v33, %v647_v32  ;;  %v601_v45 = vadd.f32 %v600_v35, %v552_v39 }
  0xe8   : > { %v1270_v38 = vpack.c.bf16 %v696_v37, %v694_v36 }
  0xea   : > { %1314 = vst [vmem:[%s1816_s3 + $0x40] sm:$0xff] %v1270_v38  }
  0xeb   : > { %v649_v40 = vpop.f32.mrf.mxu2  ;;  %v553_v42 = vpop.f32.mrf.mxu0 }
  0xec   : > { %v698_v41 = vpop.f32.mrf.mxu3  ;;  %v554_v43 = vadd.f32 %v553_v42, %v1807_v19  ;;  %v602_v44 = vpop.f32.mrf.mxu1  ;;  %v650_v48 = vadd.f32 %v649_v40, %v1811_v26 }
  0xee   : > { %v603_v46 = vadd.f32 %v602_v44, %v554_v43  ;;  %v699_v54 = vadd.f32 %v698_v41, %v650_v48 }
  0xf0   : > { %v1235_v47 = vpack.c.bf16 %v603_v46, %v601_v45 }
  0xf2   : > { %1307 = vst [vmem:[%s1816_s3 + $0x8] sm:$0xff] %v1235_v47  }
  0xf3   : > { %v651_v49 = vpop.f32.mrf.mxu2  ;;  %v556_v52 = vpop.f32.mrf.mxu0 }
  0xf4   : > { %v652_v50 = vadd.f32 %v651_v49, %v1811_v26  ;;  %v700_v51 = vpop.f32.mrf.mxu3  ;;  %v605_v53 = vpop.f32.mrf.mxu1  ;;  %v557_v57 = vadd.f32 %v556_v52, %v1807_v19 }
  0xf6   : > { %v701_v55 = vadd.f32 %v700_v51, %v652_v50  ;;  %v606_v63 = vadd.f32 %v605_v53, %v557_v57 }
  0xf8   : > { %v1275_v56 = vpack.c.bf16 %v701_v55, %v699_v54 }
  0xfa   : > { %1315 = vst [vmem:[%s1816_s3 + $0x48] sm:$0xff] %v1275_v56  }
  0xfb   : > { %v654_v58 = vpop.f32.mrf.mxu2  ;;  %v558_v60 = vpop.f32.mrf.mxu0 }
  0xfc   : > { %v703_v59 = vpop.f32.mrf.mxu3  ;;  %v559_v61 = vadd.f32 %v558_v60, %v1807_v19  ;;  %v607_v62 = vpop.f32.mrf.mxu1  ;;  %v655_v2 = vadd.f32 %v654_v58, %v1811_v26 }
  0xfe   : > { %v608_v0 = vadd.f32 %v607_v62, %v559_v61  ;;  %v704_v8 = vadd.f32 %v703_v59, %v655_v2 }
 0x100   : > { %v1240_v1 = vpack.c.bf16 %v608_v0, %v606_v63 }
 0x102   : > { %1308 = vst [vmem:[%s1816_s3 + $0x10] sm:$0xff] %v1240_v1  }
 0x103   : > { %v656_v3 = vpop.f32.mrf.mxu2  ;;  %v561_v6 = vpop.f32.mrf.mxu0 }
 0x104   : > { %v657_v4 = vadd.f32 %v656_v3, %v1811_v26  ;;  %v705_v5 = vpop.f32.mrf.mxu3  ;;  %v610_v7 = vpop.f32.mrf.mxu1  ;;  %v562_v11 = vadd.f32 %v561_v6, %v1807_v19 }
 0x106   : > { %v706_v9 = vadd.f32 %v705_v5, %v657_v4  ;;  %v611_v17 = vadd.f32 %v610_v7, %v562_v11 }
 0x108   : > { %v1280_v10 = vpack.c.bf16 %v706_v9, %v704_v8 }
 0x10a   : > { %1316 = vst [vmem:[%s1816_s3 + $0x50] sm:$0xff] %v1280_v10  }
 0x10b   : > { %v659_v12 = vpop.f32.mrf.mxu2  ;;  %v563_v14 = vpop.f32.mrf.mxu0 }
 0x10c   : > { %v708_v13 = vpop.f32.mrf.mxu3  ;;  %v564_v15 = vadd.f32 %v563_v14, %v1807_v19  ;;  %v612_v16 = vpop.f32.mrf.mxu1  ;;  %v660_v21 = vadd.f32 %v659_v12, %v1811_v26 }
 0x10e   : > { %v613_v18 = vadd.f32 %v612_v16, %v564_v15  ;;  %v709_v28 = vadd.f32 %v708_v13, %v660_v21 }
 0x110   : > { %v1245_v20 = vpack.c.bf16 %v613_v18, %v611_v17 }
 0x112   : > { %1309 = vst [vmem:[%s1816_s3 + $0x18] sm:$0xff] %v1245_v20  }
 0x113   : > { %v661_v22 = vpop.f32.mrf.mxu2  ;;  %v566_v25 = vpop.f32.mrf.mxu0 }
 0x114   : > { %v662_v23 = vadd.f32 %v661_v22, %v1811_v26  ;;  %v710_v24 = vpop.f32.mrf.mxu3  ;;  %v615_v27 = vpop.f32.mrf.mxu1  ;;  %v567_v31 = vadd.f32 %v566_v25, %v1807_v19 }
 0x116   : > { %v711_v29 = vadd.f32 %v710_v24, %v662_v23  ;;  %v616_v37 = vadd.f32 %v615_v27, %v567_v31 }
 0x118   : > { %v1285_v30 = vpack.c.bf16 %v711_v29, %v709_v28 }
 0x11a   : > { %1317 = vst [vmem:[%s1816_s3 + $0x58] sm:$0xff] %v1285_v30  }
 0x11b   : > { %v664_v32 = vpop.f32.mrf.mxu2  ;;  %v568_v34 = vpop.f32.mrf.mxu0 }
 0x11c   : > { %v713_v33 = vpop.f32.mrf.mxu3  ;;  %v569_v35 = vadd.f32 %v568_v34, %v1807_v19  ;;  %v617_v36 = vpop.f32.mrf.mxu1  ;;  %v665_v40 = vadd.f32 %v664_v32, %v1811_v26 }
 0x11e   : > { %v618_v38 = vadd.f32 %v617_v36, %v569_v35  ;;  %v714_v46 = vadd.f32 %v713_v33, %v665_v40 }
 0x120   : > { %v1250_v39 = vpack.c.bf16 %v618_v38, %v616_v37 }
 0x122   : > { %1310 = vst [vmem:[%s1816_s3 + $0x20] sm:$0xff] %v1250_v39  }
 0x123   : > { %v666_v41 = vpop.f32.mrf.mxu2  ;;  %v571_v44 = vpop.f32.mrf.mxu0 }
 0x124   : > { %v667_v42 = vadd.f32 %v666_v41, %v1811_v26  ;;  %v715_v43 = vpop.f32.mrf.mxu3  ;;  %v620_v45 = vpop.f32.mrf.mxu1  ;;  %v572_v49 = vadd.f32 %v571_v44, %v1807_v19 }
 0x126   : > { %v716_v47 = vadd.f32 %v715_v43, %v667_v42  ;;  %v621_v55 = vadd.f32 %v620_v45, %v572_v49 }
 0x128   : > { %v1290_v48 = vpack.c.bf16 %v716_v47, %v714_v46 }
 0x12a   : > { %1318 = vst [vmem:[%s1816_s3 + $0x60] sm:$0xff] %v1290_v48  }
 0x12b   : > { %v669_v50 = vpop.f32.mrf.mxu2  ;;  %v573_v52 = vpop.f32.mrf.mxu0 }
 0x12c   : > { %v718_v51 = vpop.f32.mrf.mxu3  ;;  %v574_v53 = vadd.f32 %v573_v52, %v1807_v19  ;;  %v622_v54 = vpop.f32.mrf.mxu1  ;;  %v670_v58 = vadd.f32 %v669_v50, %v1811_v26 }
 0x12e   : > { %v623_v56 = vadd.f32 %v622_v54, %v574_v53  ;;  %v719_v0 = vadd.f32 %v718_v51, %v670_v58 }
 0x130   : > { %v1255_v57 = vpack.c.bf16 %v623_v56, %v621_v55 }
 0x132   : > { %1311 = vst [vmem:[%s1816_s3 + $0x28] sm:$0xff] %v1255_v57  }
 0x133   : > { %v671_v59 = vpop.f32.mrf.mxu2  ;;  %v576_v62 = vpop.f32.mrf.mxu0 }
 0x134   : > { %v672_v60 = vadd.f32 %v671_v59, %v1811_v26  ;;  %v720_v61 = vpop.f32.mrf.mxu3  ;;  %v625_v63 = vpop.f32.mrf.mxu1  ;;  %v577_v3 = vadd.f32 %v576_v62, %v1807_v19 }
 0x136   : > { %v721_v1 = vadd.f32 %v720_v61, %v672_v60  ;;  %v626_v9 = vadd.f32 %v625_v63, %v577_v3 }
 0x138   : > { %v1295_v2 = vpack.c.bf16 %v721_v1, %v719_v0 }
 0x13a   : > { %1319 = vst [vmem:[%s1816_s3 + $0x68] sm:$0xff] %v1295_v2  }
 0x13b   : > { %v674_v4 = vpop.f32.mrf.mxu2  ;;  %v578_v6 = vpop.f32.mrf.mxu0 }
 0x13c   : > { %v723_v5 = vpop.f32.mrf.mxu3  ;;  %v579_v7 = vadd.f32 %v578_v6, %v1807_v19  ;;  %v627_v8 = vpop.f32.mrf.mxu1  ;;  %v675_v12 = vadd.f32 %v674_v4, %v1811_v26 }
 0x13e   : > { %v628_v10 = vadd.f32 %v627_v8, %v579_v7  ;;  %v724_v18 = vadd.f32 %v723_v5, %v675_v12 }
 0x140   : > { %v1260_v11 = vpack.c.bf16 %v628_v10, %v626_v9 }
 0x142   : > { %1312 = vst [vmem:[%s1816_s3 + $0x30] sm:$0xff] %v1260_v11  }
 0x143   : > { %v676_v13 = vpop.f32.mrf.mxu2  ;;  %v581_v16 = vpop.f32.mrf.mxu0 }
 0x144   : > { %v677_v14 = vadd.f32 %v676_v13, %v1811_v26  ;;  %v725_v15 = vpop.f32.mrf.mxu3  ;;  %v630_v17 = vpop.f32.mrf.mxu1  ;;  %v582_v22 = vadd.f32 %v581_v16, %v1807_v19 }
 0x146   : > { %v726_v20 = vadd.f32 %v725_v15, %v677_v14  ;;  %v631_v29 = vadd.f32 %v630_v17, %v582_v22 }
 0x148   : > { %v1300_v21 = vpack.c.bf16 %v726_v20, %v724_v18 }
 0x14a   : > { %1320 = vst [vmem:[%s1816_s3 + $0x70] sm:$0xff] %v1300_v21  }
 0x14b   : > { %v679_v23 = vpop.f32.mrf.mxu2  ;;  %v583_v25 = vpop.f32.mrf.mxu0 }
 0x14c   : > { %v728_v24 = vpop.f32.mrf.mxu3  ;;  %v584_v27 = vadd.f32 %v583_v25, %v1807_v19  ;;  %v632_v28 = vpop.f32.mrf.mxu1  ;;  %v680_v32 = vadd.f32 %v679_v23, %v1811_v26 }
 0x14e   : > { %v633_v30 = vadd.f32 %v632_v28, %v584_v27  ;;  %v729_v36 = vadd.f32 %v728_v24, %v680_v32 }
 0x150   : > { %v1265_v31 = vpack.c.bf16 %v633_v30, %v631_v29 }
 0x152   : > { %1313 = vst [vmem:[%s1816_s3 + $0x38] sm:$0xff] %v1265_v31  }
 0x153   : > { %v681_v33 = vpop.f32.mrf.mxu2 }
 0x154   : > { %v682_v34 = vadd.f32 %v681_v33, %v1811_v26  ;;  %v730_v35 = vpop.f32.mrf.mxu3 }
 0x156   : > { %v731_v37 = vadd.f32 %v730_v35, %v682_v34 }
 0x158   : > { %v1305_v38 = vpack.c.bf16 %v731_v37, %v729_v36 }
 0x15a   : > { %1321 = vst [vmem:[%s1816_s3 + $0x78] sm:$0xff] %v1305_v38  }
 0x15b   : > { %s1173_s24 = sshll.u32 %s1584_s15, 4  ;;  %s1174_s29 = sshll.u32 %s1588_s16, 6 }
 0x15c   : > { %s810_s9 = sadd.s32 %s1174_s29, %s1173_s24  ;;  %s823_s20 = sshll.u32 %s1816_s3, 4  ;;  %s824_s20 = int_to_ptr.vmem [resolvable:$true] %s823_s20 }
 0x15d   : > { %s1175_s26 = sshll.u32 %s810_s9, 2  ;;  %s1938_s5 = sld [smem:[#allocation19_spill]] }
 0x15e   : > { %s1606_s23 = smov 1024   ;;  %s1607_s27 = smov 2048  }
 0x15f   : > { %1332 = sst [smem:[#allocation10]] (%p1731_p5), %s1606_s23  ;;  %s1608_s15 = smov 16  }
 0x160   : > { %1333 = sst [smem:[#allocation10 + $0x1]] (%p1731_p5), %s1607_s27  ;;  %s1609_s16 = smov 64  }
 0x161   : > { %1334 = sst [smem:[#allocation10 + $0x2]] (%p1731_p5), %s1608_s15  ;;  %s1610_s6 = smov 4  }
 0x162   : > { %1335 = sst [smem:[#allocation10 + $0x3]] (%p1731_p5), %s1609_s16  ;;  %s1611_s7 = smov [#allocation9]  }
 0x163   : > { %s812_s10 = scalar_lea.hbm %s1938_s5, %s1175_s26  ;;  %1336 = sst [smem:[#allocation10 + $0x4]] (%p1731_p5), %s1609_s16 }
 0x164   : > { %s825_s11 = sshll.u32 %s812_s10, 4  ;;  %1337 = sst [smem:[#allocation10 + $0x5]] (%p1731_p5), %s1610_s6  ;;  %s826_s11 = int_to_ptr.hbm [resolvable:$true] %s825_s11 }
 0x165   : > { %s1612_s8 = smov 0  }
 0x166   : > { %1338 = dma.general (%p1731_p5), %s824_s20, 2048, %s826_s11, %s799_s22, %s1611_s7, [#allocation10], %s1612_s8, 0  }
 0x167 PF: > { %s1939_s2 = sld [smem:[#allocation14_spill]]  ;;  %p1360_p1 = scmp.ge.s32.totalorder %s1600_s19, 2 }
 0x169   : > { %p1352_p4 = pnand %p1360_p1, %p1692_p6 }
 0x16b   : > { %p1353_p8 = pneg %p1352_p4 }
 0x16d   : > { %s853_s12 = sand.u32 1, %s1939_s2  }
 0x16e   : > { %s854_s3 = scalar_lea.sflag [#allocation4], %s853_s12 }
 0x16f   : > { %1567 = dma.done.wait (%p1353_p8), %s854_s3, 2048  }
 0x170   : > { %1569 = vsyncadd (%p1353_p8), %s854_s3, 4294965248  ;;  %s20_s19 = sadd.s32 1, %s1600_s19   ;;  %s1941_s30 = sld [smem:[#allocation16_spill]] }
 0x171   : > { %p17_p10 = scmp.ge.s32.totalorder %s20_s19, 6   ;;  %s1942_s12 = smov %s1576_s13 }
 0x172   : > { %s1943_s13 = smov %s1580_s14  ;;  %s1944_s14 = smov %s1744_s1 }
 0x173   : > { %s1945_s15 = smov %s1592_s17  ;;  %s1946_s16 = smov %s1596_s18 }
 0x174   : > { %s1948_s18 = smov %s1954_s21  ;;  %19 = sbr.rel (!%p17_p10) target bundleno = 12 (0xc), region = 91 }
 0x176   : > { %s1947_s17 = smov %s1941_s30 }
 0x179   :  { %860 = vsyncpa [#allocation3], 1 }
 0x17a   :  { %862 = vsyncpa [#allocation3 + $0x1], 1 }
 0x17b   :  { %863 = vsyncpa [#allocation6], 1 }
 0x17c   :  { %864 = vsyncpa [#allocation4], 1 }
 0x17d   :  { %866 = vsyncpa [#allocation4 + $0x1], 1 }

</bundles_post_ra>
